<compile_context>
chip_gen: v6e
topology: v6e:2x2x1
jax: 0.10.0
libtpu: 0.0.40
codegen_flags: <defaults>
</compile_context>

<pallas_src>
import functools

import jax
import jax.numpy as jnp
from jax.experimental import pallas as pl
from jax.experimental.pallas import tpu as pltpu


_VMEM_SPEC = pl.BlockSpec(memory_space=pltpu.MemorySpace.VMEM)


# ---------------------------------------------------------------------------
# Fused Pallas kernel
# ---------------------------------------------------------------------------
def _decoder_kernel(n_layers, hid_dim, ids_ref, emb_ref, h_ref, c_ref, *refs):
    """Fused single-timestep decoder.

    ids_ref : [B, 1]   int32 token ids
    emb_ref : [V, E]   embedding table
    h_ref   : [L, B, H]
    c_ref   : [L, B, H]
    refs    : w_cat_0 [E+H, 4H], b_0 [1, 4H], ..., w_cat_{L-1}, b_{L-1},
              w_fc_t [H, P], b_fc [1, P],
              pred_out [B, P], h_out [L, B, H], c_out [L, B, H]
    Gate order follows PyTorch: i, f, g, o.
    """
    H = hid_dim
    layer_refs = refs[:2 * n_layers]
    w_fc_ref, b_fc_ref = refs[2 * n_layers], refs[2 * n_layers + 1]
    pred_ref, h_out_ref, c_out_ref = refs[2 * n_layers + 2:2 * n_layers + 5]

    B = ids_ref.shape[0]
    V = emb_ref.shape[0]

    # --- embedding lookup as a one-hot matmul (exact in f32, MXU-friendly) ---
    ids = ids_ref[...]                                          # [B, 1] int32
    vocab_iota = jax.lax.broadcasted_iota(jnp.int32, (B, V), 1)
    onehot = (vocab_iota == ids).astype(jnp.float32)            # [B, V]
    x = jnp.dot(onehot, emb_ref[...],
                preferred_element_type=jnp.float32)             # [B, E]

    # --- stacked LSTM layers (single timestep) ---
    for l in range(n_layers):
        w_cat = layer_refs[2 * l][...]                          # [in+H, 4H]
        bias = layer_refs[2 * l + 1][...]                       # [1, 4H]
        h_prev = h_ref[l]                                       # [B, H]
        c_prev = c_ref[l]                                       # [B, H]

        xh = jnp.concatenate([x, h_prev], axis=-1)              # [B, in+H]
        gates = (jnp.dot(xh, w_cat, preferred_element_type=jnp.float32)
                 + bias)                                        # [B, 4H]

        # Full-tile activations; lane mask selects tanh for the 'g' gate.
        lane = jax.lax.broadcasted_iota(jnp.int32, gates.shape, 1)
        is_g = (lane >= 2 * H) & (lane < 3 * H)
        act = jnp.where(is_g, jnp.tanh(gates), jax.nn.sigmoid(gates))

        i_g = act[:, 0 * H:1 * H]
        f_g = act[:, 1 * H:2 * H]
        g_g = act[:, 2 * H:3 * H]
        o_g = act[:, 3 * H:4 * H]

        c_new = f_g * c_prev + i_g * g_g
        h_new = o_g * jnp.tanh(c_new)

        h_out_ref[l, :, :] = h_new.astype(h_out_ref.dtype)
        c_out_ref[l, :, :] = c_new.astype(c_out_ref.dtype)
        x = h_new  # inter-layer dropout is identity in eval mode

    # --- lane-dense FC projection (padded output dim) ---
    pred = (jnp.dot(x, w_fc_ref[...], preferred_element_type=jnp.float32)
            + b_fc_ref[...])
    pred_ref[...] = pred.astype(pred_ref.dtype)


# ---------------------------------------------------------------------------
# Wrapper around pallas_call
# ---------------------------------------------------------------------------
def decoder_forward(params, input_ids, hidden, cell, n_layers):
    """Mirrors Decoder.forward (single timestep, eval-mode dropout).

    input_ids: [B] int32 token ids (PyTorch `input`, before unsqueeze(0))
    hidden:    [n_layers, B, H]
    cell:      [n_layers, B, H]
    returns:   prediction [B, output_dim], hidden', cell'
    """
    B = input_ids.shape[0]
    H = hidden.shape[-1]
    output_dim = params["embedding"].shape[0]
    padded_out = params["w_fc_t_pad"].shape[1]

    ids2d = input_ids.reshape(B, 1).astype(jnp.int32)
    inputs = [ids2d, params["embedding"], hidden, cell]
    for l in range(n_layers):
        inputs.append(params[f"w_cat_{l}"])
        inputs.append(params[f"b_{l}"])
    inputs.append(params["w_fc_t_pad"])
    inputs.append(params["b_fc_pad"])

    kernel = functools.partial(_decoder_kernel, n_layers, H)
    pred_pad, h_new, c_new = pl.pallas_call(
        kernel,
        out_shape=(
            jax.ShapeDtypeStruct((B, padded_out), jnp.float32),
            jax.ShapeDtypeStruct(hidden.shape, hidden.dtype),
            jax.ShapeDtypeStruct(cell.shape, cell.dtype),
        ),
        in_specs=[_VMEM_SPEC] * len(inputs),
        out_specs=(_VMEM_SPEC, _VMEM_SPEC, _VMEM_SPEC),
        input_output_aliases={2: 1, 3: 2},   # hidden -> h_out, cell -> c_out
    )(*inputs)

    return pred_pad[:, :output_dim], h_new, c_new


# ---------------------------------------------------------------------------
# Parameter init (weights pre-transposed / pre-concatenated / pre-padded)
# ---------------------------------------------------------------------------
def init_decoder_params(key, output_dim, emb_dim, hid_dim, n_layers,
                        dtype=jnp.float32, lane=128):
    keys = jax.random.split(key, 3 + 4 * n_layers)
    params = {}
    params["embedding"] = jax.random.normal(keys[0], (output_dim, emb_dim),
                                            dtype) * 0.1
    ki = 1
    for l in range(n_layers):
        in_dim = emb_dim if l == 0 else hid_dim
        w_ih = jax.random.normal(keys[ki], (4 * hid_dim, in_dim), dtype) * 0.1
        w_hh = jax.random.normal(keys[ki + 1], (4 * hid_dim, hid_dim), dtype) * 0.1
        b_ih = jax.random.normal(keys[ki + 2], (4 * hid_dim,), dtype) * 0.1
        b_hh = jax.random.normal(keys[ki + 3], (4 * hid_dim,), dtype) * 0.1
        ki += 4
        # concat(x, h) @ w_cat == x @ w_ih.T + h @ w_hh.T
        params[f"w_cat_{l}"] = jnp.concatenate([w_ih.T, w_hh.T], axis=0)
        params[f"b_{l}"] = (b_ih + b_hh).reshape(1, 4 * hid_dim)

    w_fc = jax.random.normal(keys[ki], (output_dim, hid_dim), dtype) * 0.1
    b_fc = jax.random.normal(keys[ki + 1], (output_dim,), dtype) * 0.1
    padded = ((output_dim + lane - 1) // lane) * lane
    w_fc_t = w_fc.T                                           # [H, output_dim]
    params["w_fc_t_pad"] = jnp.pad(w_fc_t, ((0, 0), (0, padded - output_dim)))
    params["b_fc_pad"] = jnp.pad(b_fc, (0, padded - output_dim)).reshape(1, padded)
    return params


# ---------------------------------------------------------------------------
# Pure-JAX reference (for correctness check)
# ---------------------------------------------------------------------------
def decoder_forward_ref(params, input_ids, hidden, cell, n_layers):
    x = jnp.take(params["embedding"], input_ids, axis=0)
    H = hidden.shape[-1]
    output_dim = params["embedding"].shape[0]
    new_h, new_c = [], []
    for l in range(n_layers):
        xh = jnp.concatenate([x, hidden[l]], axis=-1)
        gates = xh @ params[f"w_cat_{l}"] + params[f"b_{l}"]
        i_g = jax.nn.sigmoid(gates[:, 0 * H:1 * H])
        f_g = jax.nn.sigmoid(gates[:, 1 * H:2 * H])
        g_g = jnp.tanh(gates[:, 2 * H:3 * H])
        o_g = jax.nn.sigmoid(gates[:, 3 * H:4 * H])
        c_l = f_g * cell[l] + i_g * g_g
        h_l = o_g * jnp.tanh(c_l)
        new_h.append(h_l)
        new_c.append(c_l)
        x = h_l
    pred = x @ params["w_fc_t_pad"] + params["b_fc_pad"]
    return pred[:, :output_dim], jnp.stack(new_h, 0), jnp.stack(new_c, 0)


# ---------------------------------------------------------------------------
if __name__ == "__main__":
    OUTPUT_DIM = 64   # vocab size
    EMB_DIM = 32
    HID_DIM = 32
    N_LAYERS = 2
    BATCH = 8

    key = jax.random.PRNGKey(0)
    k_params, k_in, k_h, k_c = jax.random.split(key, 4)

    params = init_decoder_params(k_params, OUTPUT_DIM, EMB_DIM, HID_DIM,
                                 N_LAYERS)
    input_ids = jax.random.randint(k_in, (BATCH,), 0, OUTPUT_DIM,
                                   dtype=jnp.int32)
    hidden = jax.random.normal(k_h, (N_LAYERS, BATCH, HID_DIM), jnp.float32)
    cell = jax.random.normal(k_c, (N_LAYERS, BATCH, HID_DIM), jnp.float32)

    fwd = jax.jit(functools.partial(decoder_forward, n_layers=N_LAYERS))
    prediction, hidden_new, cell_new = fwd(params, input_ids, hidden, cell)
    jax.block_until_ready((prediction, hidden_new, cell_new))

    # correctness check against pure-JAX reference
    p_ref, h_ref, c_ref = decoder_forward_ref(params, input_ids, hidden, cell,
                                              N_LAYERS)
    assert prediction.shape == (BATCH, OUTPUT_DIM)
    assert hidden_new.shape == (N_LAYERS, BATCH, HID_DIM)
    assert cell_new.shape == (N_LAYERS, BATCH, HID_DIM)
    assert jnp.allclose(prediction, p_ref, atol=1e-5, rtol=1e-5)
    assert jnp.allclose(hidden_new, h_ref, atol=1e-5, rtol=1e-5)
    assert jnp.allclose(cell_new, c_ref, atol=1e-5, rtol=1e-5)

    print("KERNEL_OK")
</pallas_src>

<mosaic_0001>
module attributes {stable_mosaic.version = 11 : i64} {
  func.func @_decoder_kernel(%arg0: memref<8x1xi32, #tpu.memory_space<vmem>>, %arg1: memref<64x32xf32, #tpu.memory_space<vmem>>, %arg2: memref<2x8x32xf32, #tpu.memory_space<vmem>>, %arg3: memref<2x8x32xf32, #tpu.memory_space<vmem>>, %arg4: memref<64x128xf32, #tpu.memory_space<vmem>>, %arg5: memref<1x128xf32, #tpu.memory_space<vmem>>, %arg6: memref<64x128xf32, #tpu.memory_space<vmem>>, %arg7: memref<1x128xf32, #tpu.memory_space<vmem>>, %arg8: memref<32x128xf32, #tpu.memory_space<vmem>>, %arg9: memref<1x128xf32, #tpu.memory_space<vmem>>, %arg10: memref<8x128xf32, #tpu.memory_space<vmem>>, %arg11: memref<2x8x32xf32, #tpu.memory_space<vmem>>, %arg12: memref<2x8x32xf32, #tpu.memory_space<vmem>>) attributes {dimension_semantics = [], scalar_prefetch = 0 : i64, scratch_operands = 0 : i64, tpu.core_type = #tpu.core_type<tc>} {
    %c0 = arith.constant 0 : index
    %c0_0 = arith.constant 0 : index
    %0 = vector.load %arg0[%c0, %c0_0] : memref<8x1xi32, #tpu.memory_space<vmem>>, vector<8x1xi32>
    %1 = tpu.iota {dimensions = array<i32: 1>} : vector<8x64xi32>
    %2 = vector.broadcast %0 : vector<8x1xi32> to vector<8x64xi32>
    %3 = arith.cmpi eq, %1, %2 : vector<8x64xi32>
    %4 = arith.extui %3 : vector<8x64xi1> to vector<8x64xi32>
    %5 = arith.sitofp %4 : vector<8x64xi32> to vector<8x64xf32>
    %c0_1 = arith.constant 0 : index
    %c0_2 = arith.constant 0 : index
    %6 = vector.load %arg1[%c0_1, %c0_2] : memref<64x32xf32, #tpu.memory_space<vmem>>, vector<64x32xf32>
    %cst = arith.constant dense<0.000000e+00> : vector<8x32xf32>
    %7 = tpu.matmul %5, %6, %cst {dimension_numbers = #tpu.dot_dimension_numbers<[1], [0], [0], [1], [0, 0, 1, 1], [], []>} : vector<8x64xf32>, vector<64x32xf32>, vector<8x32xf32> -> vector<8x32xf32>
    %c0_3 = arith.constant 0 : index
    %c0_4 = arith.constant 0 : index
    %8 = vector.load %arg4[%c0_3, %c0_4] : memref<64x128xf32, #tpu.memory_space<vmem>>, vector<64x128xf32>
    %c0_5 = arith.constant 0 : index
    %c0_6 = arith.constant 0 : index
    %9 = vector.load %arg5[%c0_5, %c0_6] : memref<1x128xf32, #tpu.memory_space<vmem>>, vector<1x128xf32>
    %c0_7 = arith.constant 0 : index
    %c0_8 = arith.constant 0 : index
    %c0_9 = arith.constant 0 : index
    %10 = vector.load %arg2[%c0_7, %c0_8, %c0_9] : memref<2x8x32xf32, #tpu.memory_space<vmem>>, vector<1x8x32xf32>
    %11 = vector.shape_cast %10 : vector<1x8x32xf32> to vector<8x32xf32>
    %c0_10 = arith.constant 0 : index
    %c0_11 = arith.constant 0 : index
    %c0_12 = arith.constant 0 : index
    %12 = vector.load %arg3[%c0_10, %c0_11, %c0_12] : memref<2x8x32xf32, #tpu.memory_space<vmem>>, vector<1x8x32xf32>
    %13 = vector.shape_cast %12 : vector<1x8x32xf32> to vector<8x32xf32>
    %14 = tpu.concatenate %7, %11 in 1 : vector<8x32xf32>, vector<8x32xf32> -> vector<8x64xf32>
    %cst_13 = arith.constant dense<0.000000e+00> : vector<8x128xf32>
    %15 = tpu.matmul %14, %8, %cst_13 {dimension_numbers = #tpu.dot_dimension_numbers<[1], [0], [0], [1], [0, 0, 1, 1], [], []>} : vector<8x64xf32>, vector<64x128xf32>, vector<8x128xf32> -> vector<8x128xf32>
    %16 = vector.broadcast %9 : vector<1x128xf32> to vector<8x128xf32>
    %17 = arith.addf %15, %16 : vector<8x128xf32>
    %18 = tpu.iota {dimensions = array<i32: 1>} : vector<8x128xi32>
    %c64_i32 = arith.constant 64 : i32
    %19 = vector.broadcast %c64_i32 : i32 to vector<8x128xi32>
    %20 = arith.cmpi sge, %18, %19 : vector<8x128xi32>
    %c96_i32 = arith.constant 96 : i32
    %21 = vector.broadcast %c96_i32 : i32 to vector<8x128xi32>
    %22 = arith.cmpi slt, %18, %21 : vector<8x128xi32>
    %23 = arith.andi %20, %22 : vector<8x128xi1>
    %24 = math.tanh %17 : vector<8x128xf32>
    %25 = arith.negf %17 : vector<8x128xf32>
    %26 = math.exp %25 : vector<8x128xf32>
    %cst_14 = arith.constant 1.000000e+00 : f32
    %27 = vector.broadcast %cst_14 : f32 to vector<8x128xf32>
    %28 = arith.addf %27, %26 : vector<8x128xf32>
    %29 = arith.divf %27, %28 : vector<8x128xf32>
    %30 = arith.select %23, %24, %29 : vector<8x128xi1>, vector<8x128xf32>
    %31 = vector.extract_strided_slice %30 {offsets = [0, 0], sizes = [8, 32], strides = [1, 1]} : vector<8x128xf32> to vector<8x32xf32>
    %32 = vector.extract_strided_slice %30 {offsets = [0, 32], sizes = [8, 32], strides = [1, 1]} : vector<8x128xf32> to vector<8x32xf32>
    %33 = vector.extract_strided_slice %30 {offsets = [0, 64], sizes = [8, 32], strides = [1, 1]} : vector<8x128xf32> to vector<8x32xf32>
    %34 = vector.extract_strided_slice %30 {offsets = [0, 96], sizes = [8, 32], strides = [1, 1]} : vector<8x128xf32> to vector<8x32xf32>
    %35 = arith.mulf %32, %13 : vector<8x32xf32>
    %36 = arith.mulf %31, %33 : vector<8x32xf32>
    %37 = arith.addf %35, %36 : vector<8x32xf32>
    %38 = math.tanh %37 : vector<8x32xf32>
    %39 = arith.mulf %34, %38 : vector<8x32xf32>
    %c0_15 = arith.constant 0 : index
    %c0_16 = arith.constant 0 : index
    %c0_17 = arith.constant 0 : index
    %40 = vector.load %arg11[%c0_15, %c0_16, %c0_17] : memref<2x8x32xf32, #tpu.memory_space<vmem>>, vector<1x8x32xf32>
    %41 = vector.shape_cast %40 : vector<1x8x32xf32> to vector<8x32xf32>
    %42 = vector.shape_cast %39 : vector<8x32xf32> to vector<1x8x32xf32>
    tpu.vector_store %arg11[%c0_15, %c0_16, %c0_17], %42 {strides = array<i32>} : memref<2x8x32xf32, #tpu.memory_space<vmem>>, vector<1x8x32xf32>,
    %c0_18 = arith.constant 0 : index
    %c0_19 = arith.constant 0 : index
    %c0_20 = arith.constant 0 : index
    %43 = vector.load %arg12[%c0_18, %c0_19, %c0_20] : memref<2x8x32xf32, #tpu.memory_space<vmem>>, vector<1x8x32xf32>
    %44 = vector.shape_cast %43 : vector<1x8x32xf32> to vector<8x32xf32>
    %45 = vector.shape_cast %37 : vector<8x32xf32> to vector<1x8x32xf32>
    tpu.vector_store %arg12[%c0_18, %c0_19, %c0_20], %45 {strides = array<i32>} : memref<2x8x32xf32, #tpu.memory_space<vmem>>, vector<1x8x32xf32>,
    %c0_21 = arith.constant 0 : index
    %c0_22 = arith.constant 0 : index
    %46 = vector.load %arg6[%c0_21, %c0_22] : memref<64x128xf32, #tpu.memory_space<vmem>>, vector<64x128xf32>
    %c0_23 = arith.constant 0 : index
    %c0_24 = arith.constant 0 : index
    %47 = vector.load %arg7[%c0_23, %c0_24] : memref<1x128xf32, #tpu.memory_space<vmem>>, vector<1x128xf32>
    %c1 = arith.constant 1 : index
    %c0_25 = arith.constant 0 : index
    %c0_26 = arith.constant 0 : index
    %48 = vector.load %arg2[%c1, %c0_25, %c0_26] : memref<2x8x32xf32, #tpu.memory_space<vmem>>, vector<1x8x32xf32>
    %49 = vector.shape_cast %48 : vector<1x8x32xf32> to vector<8x32xf32>
    %c1_27 = arith.constant 1 : index
    %c0_28 = arith.constant 0 : index
    %c0_29 = arith.constant 0 : index
    %50 = vector.load %arg3[%c1_27, %c0_28, %c0_29] : memref<2x8x32xf32, #tpu.memory_space<vmem>>, vector<1x8x32xf32>
    %51 = vector.shape_cast %50 : vector<1x8x32xf32> to vector<8x32xf32>
    %52 = tpu.concatenate %39, %49 in 1 : vector<8x32xf32>, vector<8x32xf32> -> vector<8x64xf32>
    %cst_30 = arith.constant dense<0.000000e+00> : vector<8x128xf32>
    %53 = tpu.matmul %52, %46, %cst_30 {dimension_numbers = #tpu.dot_dimension_numbers<[1], [0], [0], [1], [0, 0, 1, 1], [], []>} : vector<8x64xf32>, vector<64x128xf32>, vector<8x128xf32> -> vector<8x128xf32>
    %54 = vector.broadcast %47 : vector<1x128xf32> to vector<8x128xf32>
    %55 = arith.addf %53, %54 : vector<8x128xf32>
    %56 = tpu.iota {dimensions = array<i32: 1>} : vector<8x128xi32>
    %c64_i32_31 = arith.constant 64 : i32
    %57 = vector.broadcast %c64_i32_31 : i32 to vector<8x128xi32>
    %58 = arith.cmpi sge, %56, %57 : vector<8x128xi32>
    %c96_i32_32 = arith.constant 96 : i32
    %59 = vector.broadcast %c96_i32_32 : i32 to vector<8x128xi32>
    %60 = arith.cmpi slt, %56, %59 : vector<8x128xi32>
    %61 = arith.andi %58, %60 : vector<8x128xi1>
    %62 = math.tanh %55 : vector<8x128xf32>
    %63 = arith.negf %55 : vector<8x128xf32>
    %64 = math.exp %63 : vector<8x128xf32>
    %cst_33 = arith.constant 1.000000e+00 : f32
    %65 = vector.broadcast %cst_33 : f32 to vector<8x128xf32>
    %66 = arith.addf %65, %64 : vector<8x128xf32>
    %67 = arith.divf %65, %66 : vector<8x128xf32>
    %68 = arith.select %61, %62, %67 : vector<8x128xi1>, vector<8x128xf32>
    %69 = vector.extract_strided_slice %68 {offsets = [0, 0], sizes = [8, 32], strides = [1, 1]} : vector<8x128xf32> to vector<8x32xf32>
    %70 = vector.extract_strided_slice %68 {offsets = [0, 32], sizes = [8, 32], strides = [1, 1]} : vector<8x128xf32> to vector<8x32xf32>
    %71 = vector.extract_strided_slice %68 {offsets = [0, 64], sizes = [8, 32], strides = [1, 1]} : vector<8x128xf32> to vector<8x32xf32>
    %72 = vector.extract_strided_slice %68 {offsets = [0, 96], sizes = [8, 32], strides = [1, 1]} : vector<8x128xf32> to vector<8x32xf32>
    %73 = arith.mulf %70, %51 : vector<8x32xf32>
    %74 = arith.mulf %69, %71 : vector<8x32xf32>
    %75 = arith.addf %73, %74 : vector<8x32xf32>
    %76 = math.tanh %75 : vector<8x32xf32>
    %77 = arith.mulf %72, %76 : vector<8x32xf32>
    %c1_34 = arith.constant 1 : index
    %c0_35 = arith.constant 0 : index
    %c0_36 = arith.constant 0 : index
    %78 = vector.load %arg11[%c1_34, %c0_35, %c0_36] : memref<2x8x32xf32, #tpu.memory_space<vmem>>, vector<1x8x32xf32>
    %79 = vector.shape_cast %78 : vector<1x8x32xf32> to vector<8x32xf32>
    %80 = vector.shape_cast %77 : vector<8x32xf32> to vector<1x8x32xf32>
    tpu.vector_store %arg11[%c1_34, %c0_35, %c0_36], %80 {strides = array<i32>} : memref<2x8x32xf32, #tpu.memory_space<vmem>>, vector<1x8x32xf32>,
    %c1_37 = arith.constant 1 : index
    %c0_38 = arith.constant 0 : index
    %c0_39 = arith.constant 0 : index
    %81 = vector.load %arg12[%c1_37, %c0_38, %c0_39] : memref<2x8x32xf32, #tpu.memory_space<vmem>>, vector<1x8x32xf32>
    %82 = vector.shape_cast %81 : vector<1x8x32xf32> to vector<8x32xf32>
    %83 = vector.shape_cast %75 : vector<8x32xf32> to vector<1x8x32xf32>
    tpu.vector_store %arg12[%c1_37, %c0_38, %c0_39], %83 {strides = array<i32>} : memref<2x8x32xf32, #tpu.memory_space<vmem>>, vector<1x8x32xf32>,
    %c0_40 = arith.constant 0 : index
    %c0_41 = arith.constant 0 : index
    %84 = vector.load %arg8[%c0_40, %c0_41] : memref<32x128xf32, #tpu.memory_space<vmem>>, vector<32x128xf32>
    %cst_42 = arith.constant dense<0.000000e+00> : vector<8x128xf32>
    %85 = tpu.matmul %77, %84, %cst_42 {dimension_numbers = #tpu.dot_dimension_numbers<[1], [0], [0], [1], [0, 0, 1, 1], [], []>} : vector<8x32xf32>, vector<32x128xf32>, vector<8x128xf32> -> vector<8x128xf32>
    %c0_43 = arith.constant 0 : index
    %c0_44 = arith.constant 0 : index
    %86 = vector.load %arg9[%c0_43, %c0_44] : memref<1x128xf32, #tpu.memory_space<vmem>>, vector<1x128xf32>
    %87 = vector.broadcast %86 : vector<1x128xf32> to vector<8x128xf32>
    %88 = arith.addf %85, %87 : vector<8x128xf32>
    %c0_45 = arith.constant 0 : index
    %c0_46 = arith.constant 0 : index
    %89 = vector.load %arg10[%c0_45, %c0_46] : memref<8x128xf32, #tpu.memory_space<vmem>>, vector<8x128xf32>
    tpu.vector_store %arg10[%c0_45, %c0_46], %88 {strides = array<i32>} : memref<8x128xf32, #tpu.memory_space<vmem>>, vector<8x128xf32>,
    return
  }
}

</mosaic_0001>

<bundles_post_ra>
// kernel: decoder_forward.1
= control target key start
LH: loop header
LB: loop body
LE: loop exit
PB: predicated region body
PF: predicated region fallthrough
CT: control target
= control target key end

     0   :  { %18 = vsyncpa [#allocation3], 0  ;;  %s972_s0 = inlined_call_operand.vmem [shape: s32[8,1], index: 0, kind: input, shape index: {}]   ;;  %s973_s1 = inlined_call_operand.vmem [shape: f32[64,32], index: 1, kind: input, shape index: {}]   ;;  %s974_s2 = inlined_call_operand.vmem [shape: f32[2,8,32], index: 2, kind: input, shape index: {}, may-alias: {2,11}]   ;;  %s975_s3 = inlined_call_operand.vmem [shape: f32[2,8,32], index: 3, kind: input, shape index: {}, may-alias: {3,12}]   ;;  %s976_s4 = inlined_call_operand.vmem [shape: f32[64,128], index: 4, kind: input, shape index: {}]   ;;  %s977_s5 = inlined_call_operand.vmem [shape: f32[1,128], index: 5, kind: input, shape index: {}]   ;;  %s978_s6 = inlined_call_operand.vmem [shape: f32[64,128], index: 6, kind: input, shape index: {}]   ;;  %s979_s7 = inlined_call_operand.vmem [shape: f32[1,128], index: 7, kind: input, shape index: {}]   ;;  %s980_s8 = inlined_call_operand.hbm [shape: f32[32,128], index: 8, kind: input, shape index: {}]   ;;  %s981_s9 = inlined_call_operand.vmem [shape: f32[1,128], index: 9, kind: input, shape index: {}]   ;;  %s982_s10 = inlined_call_operand.hbm [shape: f32[8,128], index: 10, kind: output, shape index: {0}]   ;;  %s983_s11 = inlined_call_operand.vmem [shape: f32[2,8,32], index: 11, kind: output, shape index: {1}, may-alias: {2,11}]   ;;  %s984_s12 = inlined_call_operand.vmem [shape: f32[2,8,32], index: 12, kind: output, shape index: {2}, may-alias: {3,12}]  }
   0x1   :  { %19 = vsyncpa [#allocation4], 0  ;;  %s712_s21 = smov [#allocation2]  }
   0x2   :  { %s41_s22 = sshll.u32 %s712_s21, 4  ;;  %s42_s22 = int_to_ptr.vmem [resolvable:$true] %s41_s22 }
   0x3   :  { %s676_s23 = scalar_lea.vmem %s42_s22, 512  ;;  %p681_p1 = scmp.lt.s32.totalorder %s42_s22, %s42_s22 }
   0x4   :  { %p677_p0 = scmp.ne.s32.totalorder %s42_s22, %s676_s23  ;;  %p682_p2 = scmp.lt.s32.totalorder %s676_s23, %s676_s23 }
   0x6   :  { %p683_p3 = por %p682_p2, %p681_p1 }
   0x8   :  { %p684_p4 = pnand %p683_p3, %p677_p0 }
   0xa   :  { %687 = shalt.err (!%p684_p4)
}
   0xb   :  { %s713_s24 = smov 128   ;;  %s714_s25 = smov 8  }
   0xc   :  { %47 = dma.hbm_to_vmem [thread:$0]  %s980_s8, 512, %s42_s22, [#allocation3], %s713_s24, %s713_s24, %s714_s25  }
   0xd   :  { %708 = dma.done.wait [#allocation3], 512  }
   0xe   :  { %709 = vsyncadd [#allocation3], 4294966784  ;;  %v715_v0 = vmov 0   ;;  %v716_v1 = vmov 0.0   ;;  %vm717_vm0 = vmmov 0   ;;  %v53_v2 = vld [vmem:[%s972_s0] sm:$0xff]  ;;  %v54_v19 = vlaneseq }
   0xf   :  { %651 = vset.pattern.permute.xlu0 %v715_v0  ;;  %573 = vmatprep.subr.mxu0 %v716_v1  ;;  %v69_v3 = vld [vmem:[%s973_s1 + $0x38] sm:$0xff]  ;;  %v68_v4 = vld [vmem:[%s973_s1 + $0x30] sm:$0xff]  ;;  %v67_v5 = vld [vmem:[%s973_s1 + $0x28] sm:$0xff]  ;;  %s718_s24 = smov 32   ;;  %vm70_vm1 = vcmask 523264   ;;  %vm159_vm3 = vcmask 261120  }
  0x10   :  { %592 = vmatprep.subr.mxu1 %v716_v1  ;;  %589 = vmatprep.mubr.msk.f32.mxu0 %vm717_vm0, %v716_v1  ;;  %v153_v6 = vld [vmem:[%s974_s2] sm:$0xff]  ;;  %v151_v7 = vld [vmem:[%s976_s4 + $0x38] sm:$0xff]  ;;  %v150_v9 = vld [vmem:[%s976_s4 + $0x30] sm:$0xff]  ;;  %v55_v20 = vand.u32 127, %v54_v19  ;;  %s721_s15 = smov [#allocation5]  }
  0x11   :  { %608 = vmatprep.mubr.msk.f32.mxu1 %vm717_vm0, %v716_v1  ;;  %57 = vperm.xlu0 %651, %v53_v2   ;;  %v66_v8 = vld [vmem:[%s973_s1 + $0x20] sm:$0xff]  ;;  %v65_v10 = vld [vmem:[%s973_s1 + $0x18] sm:$0xff]  ;;  %v149_v11 = vld [vmem:[%s976_s4 + $0x28] sm:$0xff]  ;;  %s510_s16 = sshll.u32 %s721_s15, 4  ;;  %s511_s16 = int_to_ptr.vmem [resolvable:$true] %s510_s16 }
  0x12   :  { %574 = vmatpush3.msra.mxu0 %v69_v3  ;;  %593 = vmatpush3.msra.mxu1 %v151_v7  ;;  %v64_v12 = vld [vmem:[%s973_s1 + $0x10] sm:$0xff]  ;;  %v148_v13 = vld [vmem:[%s976_s4 + $0x20] sm:$0xff]  ;;  %v63_v14 = vld [vmem:[%s973_s1 + $0x8] sm:$0xff]  ;;  %vm240_vm4 = vcmp.ge.s32.totalorder %v55_v20, 64  ;;  %vm241_vm5 = vcmp.lt.s32.totalorder %v55_v20, 96  ;;  %p693_p6 = scmp.lt.s32.totalorder %s511_s16, %s511_s16 }
  0x13   :  { %575 = vmatprep.subr.mxu0 %v716_v1  ;;  %594 = vmatprep.subr.mxu1 %v716_v1  ;;  %v147_v15 = vld [vmem:[%s976_s4 + $0x18] sm:$0xff]  ;;  %v62_v16 = vld [vmem:[%s973_s1] sm:$0xff]  ;;  %v146_v17 = vld [vmem:[%s976_s4 + $0x10] sm:$0xff] }
  0x14   :  { %576 = vmatpush3.msra.mxu0 %v68_v4  ;;  %595 = vmatpush3.msra.mxu1 %v150_v9  ;;  %v145_v18 = vld [vmem:[%s976_s4 + $0x8] sm:$0xff]  ;;  %v144_v23 = vld [vmem:[%s976_s4] sm:$0xff]  ;;  %vm878_vm6 = vmand %vm240_vm4, %vm241_vm5  ;;  %s719_s4 = smov 64  }
  0x15   :  { %577 = vmatprep.subr.mxu0 %v716_v1  ;;  %156 = vrot.lane.b32.xlu0 %v153_v6, %s718_s24  ;;  %v529_v28 = vld [vmem:[%s977_s5] ss:$0 sm:$0xff]  ;;  %v289_v46 = vld [vmem:[%s978_s6 + $0x38] sm:$0xff]  ;;  %v288_v47 = vld [vmem:[%s978_s6 + $0x30] sm:$0xff] }
  0x16   :  { %578 = vmatpush3.msra.mxu0 %v67_v5  ;;  %596 = vmatprep.subr.mxu1 %v716_v1  ;;  %v154_v39 = vld [vmem:[%s975_s3] sm:$0xff]  ;;  %v287_v48 = vld [vmem:[%s978_s6 + $0x28] sm:$0xff]  ;;  %v285_v50 = vld [vmem:[%s978_s6 + $0x18] sm:$0xff] }
  0x17   :  { %579 = vmatprep.subr.mxu0 %v716_v1  ;;  %597 = vmatpush3.msra.mxu1 %v149_v11  ;;  %v286_v49 = vld [vmem:[%s978_s6 + $0x20] sm:$0xff]  ;;  %v284_v51 = vld [vmem:[%s978_s6 + $0x10] sm:$0xff]  ;;  %v283_v53 = vld [vmem:[%s978_s6 + $0x8] sm:$0xff] }
  0x18   :  { %580 = vmatpush3.msra.mxu0 %v66_v8  ;;  %598 = vmatprep.subr.mxu1 %v716_v1  ;;  %v532_v54 = vld [vmem:[%s974_s2 + $0x8] sm:$0xff]  ;;  %v282_v55 = vld [vmem:[%s978_s6] sm:$0xff] }
  0x19   :  { %581 = vmatprep.subr.mxu0 %v716_v1  ;;  %599 = vmatpush3.msra.mxu1 %v148_v13  ;;  %v533_v56 = vld [vmem:[%s975_s3 + $0x8] sm:$0xff]  ;;  %v534_v62 = vld [vmem:[%s979_s7] ss:$0 sm:$0xff]  ;;  %s720_s3 = smov 96  }
  0x1a   :  { %582 = vmatpush3.msra.mxu0 %v65_v10  ;;  %600 = vmatprep.subr.mxu1 %v716_v1 }
  0x1b   :  { %583 = vmatprep.subr.mxu0 %v716_v1  ;;  %601 = vmatpush3.msra.mxu1 %v147_v15  ;;  %v423_v15 = vld [vmem:[#allocation2 + $0x18] sm:$0xff] }
  0x1c   :  { %584 = vmatpush3.msra.mxu0 %v64_v12  ;;  %602 = vmatprep.subr.mxu1 %v716_v1 }
  0x1d   :  { %585 = vmatprep.subr.mxu0 %v716_v1  ;;  %603 = vmatpush3.msra.mxu1 %v146_v17  ;;  %v421_v17 = vld [vmem:[#allocation2 + $0x8] sm:$0xff] }
  0x1e   :  { %586 = vmatpush3.msra.mxu0 %v63_v14  ;;  %604 = vmatprep.subr.mxu1 %v716_v1 }
  0x1f   :  { %587 = vmatprep.subr.mxu0 %v716_v1  ;;  %605 = vmatpush3.msra.mxu1 %v145_v18  ;;  %v420_v18 = vld [vmem:[#allocation2] sm:$0xff] }
  0x20   :  { %588 = vmatpush3.msra.mxu0 %v62_v16  ;;  %606 = vmatprep.subr.mxu1 %v716_v1  ;;  %v422_v16 = vld [vmem:[#allocation2 + $0x10] sm:$0xff] }
  0x21   :  { %611 = vmatprep.subr.mxu0 %v716_v1  ;;  %607 = vmatpush3.msra.mxu1 %v144_v23 }
  0x22   :  { %630 = vmatprep.subr.mxu1 %v716_v1 }
  0x8c   :  { %v58_v21 = vpop.permute.xlu0 %57 }
  0x8d   :  { %vm59_vm2 = vcmp.eq.s32.totalorder %v55_v20, %v58_v21 }
  0x8e   :  { %v527_v22 = vsel %vm59_vm2, 1.0, %v716_v1 }
  0x8f   :  { %590 = vmatmul.mubr.msk.f32.vlgmr.msra.gmra.mxu0 %vm70_vm1, %v527_v22 }
  0x90   :  { %627 = vmatprep.mubr.msk.f32.mxu0 %vm717_vm0, %v716_v1  ;;  %v157_v24 = vpop.permute.xlu0 %156  ;;  %612 = vmatpush3.msra.mxu0 %v289_v46 }
  0x91   :  { %613 = vmatprep.subr.mxu0 %v716_v1 }
  0x92   :  { %614 = vmatpush3.msra.mxu0 %v288_v47 }
  0x93   :  { %615 = vmatprep.subr.mxu0 %v716_v1 }
  0x94   :  { %616 = vmatpush3.msra.mxu0 %v287_v48 }
  0x95   :  { %617 = vmatprep.subr.mxu0 %v716_v1 }
  0x96   :  { %618 = vmatpush3.msra.mxu0 %v286_v49 }
  0x97   :  { %619 = vmatprep.subr.mxu0 %v716_v1 }
  0x98   :  { %620 = vmatpush3.msra.mxu0 %v285_v50 }
  0x99   :  { %621 = vmatprep.subr.mxu0 %v716_v1 }
  0x9a   :  { %622 = vmatpush3.msra.mxu0 %v284_v51 }
  0x9b   :  { %623 = vmatprep.subr.mxu0 %v716_v1 }
  0x9c   :  { %624 = vmatpush3.msra.mxu0 %v283_v53 }
  0x9d   :  { %625 = vmatprep.subr.mxu0 %v716_v1 }
  0x9e   :  { %626 = vmatpush3.msra.mxu0 %v282_v55 }
 0x14f   :  { %v140_v25 = vpop.f32.mrf.mxu0 }
 0x150   :  { %v160_v26 = vsel %vm159_vm3, %v140_v25, %v157_v24  ;;  %v539_v24 = vld [vmem:[%s981_s9] ss:$0 sm:$0xff] }
 0x151   :  { %v591_v27 = vpop.f32.mrf.mxu0  ;;  %609 = vmatmul.mubr.msk.f32.vlgmr.msra.gmra.mxu1 %vm70_vm1, %v160_v26 }
 0x152   :  { %638 = vmatprep.mubr.msk.f32.mxu1 %vm717_vm0, %v716_v1  ;;  %631 = vmatpush3.msra.mxu1 %v423_v15 }
 0x153   :  { %632 = vmatprep.subr.mxu1 %v716_v1 }
 0x154   :  { %633 = vmatpush3.msra.mxu1 %v422_v16 }
 0x155   :  { %634 = vmatprep.subr.mxu1 %v716_v1 }
 0x156   :  { %635 = vmatpush3.msra.mxu1 %v421_v17 }
 0x157   :  { %636 = vmatprep.subr.mxu1 %v716_v1 }
 0x158   :  { %637 = vmatpush3.msra.mxu1 %v420_v18 }
 0x211   :  { %v236_v29 = vpop.f32.mrf.mxu1 }
 0x212   :  { %v237_v30 = vadd.f32 %v529_v28, %v236_v29 }
 0x213   :  { %v610_v31 = vpop.f32.mrf.mxu1 }
 0x214   :  { %v531_v32 = vmul.f32 -1.442695, %v237_v30 }
 0x216   :  { %652 = vpow2.f32 %v531_v32 }
 0x217   :  { %654 = vtanh.f32 %v237_v30 }
 0x223   :  { %v653_v33 = vpop.eup %652 }
 0x224   :  { %v247_v34 = vadd.f32 1.0, %v653_v33  ;;  %v655_v36 = vpop.eup %654 }
 0x226   :  { %656 = vrcp.f32 %v247_v34 }
 0x233   :  { %v657_v37 = vpop.eup %656 }
 0x234   :  { %v250_v38 = vsel %vm878_vm6, %v655_v36, %v657_v37 }
 0x235   :  { %257 = vrot.lane.b32.xlu1 %v250_v38, %s719_s4 }
 0x239   :  { %252 = vrot.lane.b32.xlu1 %v154_v39, %s718_s24 }
 0x2a7   :  { %v258_v40 = vpop.permute.xlu1 %257 }
 0x2a8   :  { %v260_v41 = vmul.f32 %v258_v40, %v250_v38 }
 0x2aa   :  { %262 = vrot.lane.b32.xlu0 %v260_v41, %s718_s24 }
 0x2ab   :  { %v253_v42 = vpop.permute.xlu1 %252 }
 0x2ac   :  { %v255_v43 = vmul.f32 %v253_v42, %v250_v38 }
 0x31c   :  { %v263_v44 = vpop.permute.xlu0 %262 }
 0x31d   :  { %v890_v45 = vadd.f32 %v263_v44, %v255_v43 }
 0x31f   :  { %658 = vtanh.f32 %v890_v45 }
 0x32c   :  { %v659_v52 = vpop.eup %658 }
 0x32d   :  { %268 = vrot.lane.b32.xlu1 %v659_v52, %s719_s4 }
 0x331   :  { %296 = vrot.lane.b32.xlu1 %v532_v54, %s718_s24 }
 0x335   :  { %388 = vrot.lane.b32.xlu1 %v533_v56, %s718_s24 }
 0x39f   :  { %v269_v57 = vpop.permute.xlu1 %268 }
 0x3a0   :  { %v271_v58 = vmul.f32 %v269_v57, %v250_v38 }
 0x3a2   :  { %273 = vrot.lane.b32.xlu0 %v271_v58, %s718_s24 }
 0x3a3   :  { %v297_v59 = vpop.permute.xlu1 %296 }
 0x3a7   :  { %v389_v11 = vpop.permute.xlu1 %388 }
 0x414   :  { %v274_v60 = vpop.permute.xlu0 %273 }
 0x415   :  { %276 = vst.msk [vmem:[%s983_s11] sm:$0xff] %vm159_vm3, %v274_v60  ;;  %v299_v61 = vsel %vm159_vm3, %v274_v60, %v297_v59 }
 0x416   :  { %628 = vmatmul.mubr.msk.f32.vlgmr.msra.gmra.mxu0 %vm70_vm1, %v299_v61 }
 0x4d6   :  { %v375_v63 = vpop.f32.mrf.mxu0 }
 0x4d7   :  { %v376_v0 = vadd.f32 %v534_v62, %v375_v63 }
 0x4d8   :  { %v629_v2 = vpop.f32.mrf.mxu0 }
 0x4d9   :  { %v536_v3 = vmul.f32 -1.442695, %v376_v0 }
 0x4db   :  { %660 = vpow2.f32 %v536_v3 }
 0x4dc   :  { %662 = vtanh.f32 %v376_v0 }
 0x4e8   :  { %v661_v4 = vpop.eup %660 }
 0x4e9   :  { %v383_v5 = vadd.f32 1.0, %v661_v4  ;;  %v663_v6 = vpop.eup %662 }
 0x4eb   :  { %664 = vrcp.f32 %v383_v5 }
 0x4f8   :  { %v665_v7 = vpop.eup %664 }
 0x4f9   :  { %v386_v8 = vsel %vm878_vm6, %v663_v6, %v665_v7 }
 0x4fa   :  { %393 = vrot.lane.b32.xlu0 %v386_v8, %s719_s4  ;;  %v391_v12 = vmul.f32 %v389_v11, %v386_v8 }
 0x56c   :  { %v394_v9 = vpop.permute.xlu0 %393 }
 0x56d   :  { %v396_v10 = vmul.f32 %v394_v9, %v386_v8 }
 0x56f   :  { %398 = vrot.lane.b32.xlu0 %v396_v10, %s718_s24 }
 0x5e1   :  { %v399_v13 = vpop.permute.xlu0 %398 }
 0x5e2   :  { %v401_v14 = vadd.f32 %v399_v13, %v391_v12 }
 0x5e4   :  { %666 = vtanh.f32 %v401_v14 }
 0x5f1   :  { %v667_v19 = vpop.eup %666 }
 0x5f2   :  { %404 = vrot.lane.b32.xlu1 %v667_v19, %s719_s4 }
 0x5f6   :  { %278 = vrot.lane.b32.xlu1 %v890_v45, %s720_s3 }
 0x664   :  { %v405_v20 = vpop.permute.xlu1 %404 }
 0x665   :  { %v407_v21 = vmul.f32 %v405_v20, %v386_v8 }
 0x667   :  { %409 = vrot.lane.b32.xlu0 %v407_v21, %s718_s24 }
 0x668   :  { %v279_v22 = vpop.permute.xlu1 %278 }
 0x669   :  { %281 = vst.msk [vmem:[%s984_s12] sm:$0xff] %vm159_vm3, %v279_v22 }
 0x66b   :  { %415 = vrot.lane.b32.xlu0 %v401_v14, %s720_s3 }
 0x6d9   :  { %v410_v23 = vpop.permute.xlu0 %409 }
 0x6da   :  { %537 = vst.msk [vmem:[%s983_s11 + $0x8] sm:$0xff] %vm159_vm3, %v410_v23  ;;  %639 = vmatmul.mubr.msk.f32.vlgmr.msra.gmra.mxu1 %vm159_vm3, %v410_v23  ;;  %s688_s11 = scalar_lea.vmem %s511_s16, 128 }
 0x6db   :  { %p689_p5 = scmp.ne.s32.totalorder %s511_s16, %s688_s11  ;;  %p694_p7 = scmp.lt.s32.totalorder %s688_s11, %s688_s11 }
 0x6dd   :  { %v416_v1 = vpop.permute.xlu0 %415  ;;  %p695_p8 = por %p694_p7, %p693_p6 }
 0x6de   :  { %538 = vst.msk [vmem:[%s984_s12 + $0x8] sm:$0xff] %vm159_vm3, %v416_v1 }
 0x6df   :  { %p696_p9 = pnand %p695_p8, %p689_p5 }
 0x79a   :  { %v499_v25 = vpop.f32.mrf.mxu1 }
 0x79b   :  { %v500_v26 = vadd.f32 %v539_v24, %v499_v25 }
 0x79c   :  { %v640_v27 = vpop.f32.mrf.mxu1 }
 0x79d   :  { %503 = vst [vmem:[#allocation5] sm:$0xff] %v500_v26 }
 0x79e   :  { %699 = shalt.err (!%p696_p9)
}
 0x79f   :  { %513 = dma.vmem_to_hbm [thread:$0]  %s511_s16, 128, %s982_s10, [#allocation4]  }
 0x7a0   :  { %710 = dma.done.wait [#allocation4], 128  }
 0x7a1   :  { %711 = vsyncadd [#allocation4], 4294967168 }
 0x7a2   :  { %525 = vsyncpa [#allocation3], 1 }
 0x7a3   :  { %526 = vsyncpa [#allocation4], 1 }

</bundles_post_ra>
